<compile_context>
chip_gen: v6e
topology: v6e:2x2x1
jax: 0.10.0
libtpu: 0.0.40
codegen_flags: <defaults>
</compile_context>

<pallas_src>
import jax
import jax.numpy as jnp
from jax.experimental import pallas as pl
from jax.experimental.pallas import tpu as pltpu

_LANE = 128
_SUBLANE = 8


def _round_up(n, m):
    return ((n + m - 1) // m) * m


def _pad2(a, rows, cols):
    return jnp.pad(a, ((0, rows - a.shape[0]), (0, cols - a.shape[1])))


def _vmem_capacity_bytes():
    try:
        return int(pltpu.get_tpu_info().vmem_capacity_bytes)
    except Exception:
        return 128 << 20  # conservative default (v5e/v6e class parts)


def _to(v, dt):
    return v if v.dtype == dt else v.astype(dt)


# ----------------------------------------------------------------------------
# Kernel body: one batch tile of the autoencoder forward (4 matmuls + ReLU/Sig)
# ----------------------------------------------------------------------------
def _ae_kernel(x_ref,
               w1_ref, b1_ref,
               w2_ref, b2_ref,
               w3_ref, b3_ref,
               w4_ref, b4_ref,
               out_ref, code_ref):
    mx = w1_ref.dtype                       # bf16 or f32 MXU operands
    x = _to(x_ref[...], mx)                 # x already streamed in mx dtype

    # ---- encoder ----
    h1 = jnp.dot(x, w1_ref[...], preferred_element_type=jnp.float32) + b1_ref[...]
    h1 = jnp.maximum(h1, 0.0)

    code = (jnp.dot(_to(h1, mx), w2_ref[...],
                    preferred_element_type=jnp.float32) + b2_ref[...])
    code = jnp.maximum(code, 0.0)

    # ---- decoder ----
    d1 = (jnp.dot(_to(code, mx), w3_ref[...],
                  preferred_element_type=jnp.float32) + b3_ref[...])
    d1 = jnp.maximum(d1, 0.0)

    logits = (jnp.dot(_to(d1, mx), w4_ref[...],
                      preferred_element_type=jnp.float32) + b4_ref[...])
    recon = jax.nn.sigmoid(logits)          # EUP logistic, keeps the VALU free

    out_ref[...] = recon.astype(out_ref.dtype)
    code_ref[...] = code.astype(code_ref.dtype)


# ----------------------------------------------------------------------------
# One-time parameter preparation (hoisted out of the forward path)
# ----------------------------------------------------------------------------
def prepare_params(params):
    """Pad / cast weights & biases to lane-aligned shapes.  Call ONCE.

    params: dict with pre-transposed weights w1..w4 ([in, out]) and biases
    b1..b4.  Weight dtype (f32 / bf16) selects the MXU-operand precision.
    """
    w_dtype = params["w1"].dtype
    input_size, h1_size = params["w1"].shape
    code_size = params["w2"].shape[1]
    in_p = _round_up(input_size, _LANE)
    h1_p = _round_up(h1_size, _LANE)
    code_p = _round_up(code_size, _LANE)

    def bias2d(b):
        return jnp.asarray(b, jnp.float32).reshape(1, -1)

    prepared = {
        "w1": _pad2(jnp.asarray(params["w1"], w_dtype), in_p, h1_p),
        "b1": _pad2(bias2d(params["b1"]), 1, h1_p),
        "w2": _pad2(jnp.asarray(params["w2"], w_dtype), h1_p, code_p),
        "b2": _pad2(bias2d(params["b2"]), 1, code_p),
        "w3": _pad2(jnp.asarray(params["w3"], w_dtype), code_p, h1_p),
        "b3": _pad2(bias2d(params["b3"]), 1, h1_p),
        "w4": _pad2(jnp.asarray(params["w4"], w_dtype), h1_p, in_p),
        "b4": _pad2(bias2d(params["b4"]), 1, in_p),
    }
    meta = {
        "input_size": input_size, "h1_size": h1_size, "code_size": code_size,
        "in_p": in_p, "h1_p": h1_p, "code_p": code_p, "w_dtype": w_dtype,
    }
    return prepared, meta


def _pick_tile_b(B, tile_b, h1_p):
    b8 = _round_up(max(B, 1), _SUBLANE)
    if tile_b is None:
        tile_b = 256
    tile_b = _round_up(max(_SUBLANE, min(int(tile_b), b8)), _SUBLANE)
    # Large h1 f32 intermediates spill far past the 64-vreg file: shrink tile.
    if h1_p >= 1024 and tile_b > 128:
        tile_b = 128
    # Prefer >= 2 grid steps so streamed x/recon/code DMAs overlap compute.
    if tile_b >= b8 and b8 >= 256:
        tile_b = max(128, _round_up(b8 // 2, _SUBLANE))
    return tile_b


# ----------------------------------------------------------------------------
# pallas_call builder / invocation
# ----------------------------------------------------------------------------
def _call_kernel(xp, prepared, meta, tile_b, b_pad, single_buffer):
    in_p, h1_p, code_p = meta["in_p"], meta["h1_p"], meta["code_p"]
    w_dtype = meta["w_dtype"]
    grid = (b_pad // tile_b,)

    # TODO(synk): for weight matrices that exceed the per-TC VMEM budget
    # (e.g. bf16 autoencoders with input >= ~4k on v7x's 64 MiB), add a
    # K-tiled grid axis with an f32 accumulator scratch instead of full
    # weight residency.  Not needed at these shapes.
    def resident(shape):
        # Constant block index -> VMEM-resident; single-buffered so each
        # weight/bias occupies VMEM exactly once (no pointless double buffer).
        if single_buffer:
            return pl.BlockSpec(shape, lambda i: (0, 0),
                                pipeline_mode=pl.Buffered(1))
        return pl.BlockSpec(shape, lambda i: (0, 0))

    in_specs = [
        pl.BlockSpec((tile_b, in_p), lambda i: (i, 0)),   # x streams over batch
        resident((in_p, h1_p)), resident((1, h1_p)),
        resident((h1_p, code_p)), resident((1, code_p)),
        resident((code_p, h1_p)), resident((1, h1_p)),
        resident((h1_p, in_p)), resident((1, in_p)),
    ]
    out_specs = (
        pl.BlockSpec((tile_b, in_p), lambda i: (i, 0)),    # reconstruction
        pl.BlockSpec((tile_b, code_p), lambda i: (i, 0)),  # code (out_en)
    )

    # VMEM budget: resident weights (1x when single-buffered) + double-buffered
    # streamed tiles + f32 intermediates + slack; capped generation-aware.
    w_item = jnp.dtype(w_dtype).itemsize
    x_item = jnp.dtype(xp.dtype).itemsize
    w_elems = in_p * h1_p + h1_p * code_p + code_p * h1_p + h1_p * in_p
    b_elems = 2 * h1_p + code_p + in_p
    w_bufs = 1 if single_buffer else 2
    w_bytes = w_bufs * w_elems * w_item
    b_bytes = w_bufs * b_elems * 4
    io_bytes = 2 * tile_b * in_p * x_item + 2 * tile_b * (in_p + code_p) * 4
    scratch = tile_b * (2 * h1_p + code_p + in_p) * 4
    budget = int(1.25 * (w_bytes + b_bytes + io_bytes + scratch)) + (4 << 20)

    cap = _vmem_capacity_bytes()
    headroom = (12 << 20) if cap <= (64 << 20) else (16 << 20)   # v7x vs v5e/v6e
    vmem_limit = min(max(budget, 32 << 20), max(32 << 20, cap - headroom))

    cost = pl.CostEstimate(
        flops=2 * b_pad * w_elems,
        transcendentals=b_pad * in_p,                     # exp inside sigmoid
        bytes_accessed=int(xp.size * x_item + w_elems * w_item + b_elems * 4
                           + b_pad * (in_p + code_p) * 4),
    )

    return pl.pallas_call(
        _ae_kernel,
        out_shape=(
            jax.ShapeDtypeStruct((b_pad, in_p), jnp.float32),
            jax.ShapeDtypeStruct((b_pad, code_p), jnp.float32),
        ),
        grid_spec=pltpu.PrefetchScalarGridSpec(
            num_scalar_prefetch=0,
            grid=grid,
            in_specs=in_specs,
            out_specs=out_specs,
        ),
        compiler_params=pltpu.CompilerParams(
            # TODO(synk): swap to pltpu.CORE_PARALLEL on v7x (2 TC/chip) once a
            # reliable chip probe is wired up; "parallel" is a safe no-op on
            # 1-TC parts and still allows megacore sharding where supported.
            dimension_semantics=("parallel",),
            vmem_limit_bytes=int(vmem_limit),
        ),
        cost_estimate=cost,
    )(xp, prepared["w1"], prepared["b1"], prepared["w2"], prepared["b2"],
      prepared["w3"], prepared["b3"], prepared["w4"], prepared["b4"])


_SINGLE_BUFFER_OK = None  # cache: does this JAX build accept pl.Buffered(1)?


def autoencoder_apply(prepared, meta, x, *, tile_b=None):
    """x: [B, input_size].  Returns (reconstruction [B, input_size],
    code [B, code_size]) matching the PyTorch forward()."""
    global _SINGLE_BUFFER_OK
    B, input_size = x.shape
    assert input_size == meta["input_size"]
    in_p = meta["in_p"]
    w_dtype = meta["w_dtype"]

    tile_b = _pick_tile_b(B, tile_b, meta["h1_p"])
    b_pad = _round_up(B, tile_b)

    # Stream x in the MXU-operand dtype: for bf16 weights this halves the HBM
    # traffic of the only streamed input and drops the per-step f32->bf16 pack.
    x_stream_dtype = w_dtype if jnp.dtype(w_dtype).itemsize < 4 else jnp.float32
    xp = _pad2(jnp.asarray(x, x_stream_dtype), b_pad, in_p)

    if _SINGLE_BUFFER_OK is not False:
        try:
            recon_p, code_out = _call_kernel(xp, prepared, meta, tile_b, b_pad,
                                             single_buffer=True)
            _SINGLE_BUFFER_OK = True
        except Exception:
            _SINGLE_BUFFER_OK = False
            recon_p, code_out = _call_kernel(xp, prepared, meta, tile_b, b_pad,
                                             single_buffer=False)
    else:
        recon_p, code_out = _call_kernel(xp, prepared, meta, tile_b, b_pad,
                                         single_buffer=False)

    return recon_p[:B, :input_size], code_out[:B, :meta["code_size"]]


# ----------------------------------------------------------------------------
# Init + pure-JAX reference (for correctness checking)
# ----------------------------------------------------------------------------
def init_params(key, input_size, code_size, hidden_first_level_size):
    """Mimics nn.Linear's uniform(-1/sqrt(fan_in), +1/sqrt(fan_in)) init.
    Weights stored pre-transposed as [in, out]."""
    def linear(k, fan_in, fan_out):
        kw, kb = jax.random.split(k)
        bound = 1.0 / jnp.sqrt(fan_in)
        w = jax.random.uniform(kw, (fan_in, fan_out), jnp.float32, -bound, bound)
        b = jax.random.uniform(kb, (1, fan_out), jnp.float32, -bound, bound)
        return w, b

    k1, k2, k3, k4 = jax.random.split(key, 4)
    w1, b1 = linear(k1, input_size, hidden_first_level_size)
    w2, b2 = linear(k2, hidden_first_level_size, code_size)
    w3, b3 = linear(k3, code_size, hidden_first_level_size)
    w4, b4 = linear(k4, hidden_first_level_size, input_size)
    return {"w1": w1, "b1": b1, "w2": w2, "b2": b2,
            "w3": w3, "b3": b3, "w4": w4, "b4": b4}


def reference_forward(x, p):
    """Pure-JAX reference matching the kernel's dtype policy."""
    dt = p["w1"].dtype

    def lin(a, w, b):
        return jnp.dot(a.astype(dt), w, preferred_element_type=jnp.float32) + b

    h1 = jnp.maximum(lin(x, p["w1"], p["b1"]), 0.0)
    code = jnp.maximum(lin(h1, p["w2"], p["b2"]), 0.0)
    d1 = jnp.maximum(lin(code, p["w3"], p["b3"]), 0.0)
    recon = jax.nn.sigmoid(lin(d1, p["w4"], p["b4"]))
    return recon, code


if __name__ == "__main__":
    # Small shapes consistent with the module: Autoencoder(input_size=64,
    # code_size=16, hidden_first_level_size=32), batch of 8 flat vectors.
    batch = 8
    input_size = 64
    hidden_first = 32
    code_size = 16

    key = jax.random.PRNGKey(0)
    k_x, k_p = jax.random.split(key)
    x = jax.random.uniform(k_x, (batch, input_size), jnp.float32)
    params = init_params(k_p, input_size, code_size, hidden_first)

    # --- f32 path (exact vs reference) ---
    prepared, meta = prepare_params(params)          # one-time weight prep
    recon, code = autoencoder_apply(prepared, meta, x)
    jax.block_until_ready((recon, code))

    recon_ref, code_ref = reference_forward(x, params)
    assert recon.shape == (batch, input_size)
    assert code.shape == (batch, code_size)
    assert jnp.allclose(recon, recon_ref, atol=1e-5, rtol=1e-5)
    assert jnp.allclose(code, code_ref, atol=1e-5, rtol=1e-5)

    # --- bf16 MXU-operand path (f32 accumulation), v6e/v7x optimization ---
    params_bf16 = {k: (v.astype(jnp.bfloat16) if k.startswith("w") else v)
                   for k, v in params.items()}
    prepared_b, meta_b = prepare_params(params_bf16)
    recon_b, code_b = autoencoder_apply(prepared_b, meta_b, x)
    jax.block_until_ready((recon_b, code_b))
    recon_rb, code_rb = reference_forward(x, params_bf16)
    assert jnp.allclose(recon_b, recon_rb, atol=5e-2, rtol=5e-2)
    assert jnp.allclose(code_b, code_rb, atol=5e-2, rtol=5e-2)

    # TODO(synk): MyTrain / test_check (SGD training + eval loops) are host-side
    # utilities, not part of the forward pass, and are not ported.
    print("KERNEL_OK")
</pallas_src>

<mosaic_0001>
module attributes {stable_mosaic.version = 11 : i64} {
  func.func @_ae_kernel(%arg0: i32, %arg1: memref<8x128xf32, #tpu.memory_space<vmem>>, %arg2: memref<128x128xf32, #tpu.memory_space<vmem>>, %arg3: memref<1x128xf32, #tpu.memory_space<vmem>>, %arg4: memref<128x128xf32, #tpu.memory_space<vmem>>, %arg5: memref<1x128xf32, #tpu.memory_space<vmem>>, %arg6: memref<128x128xf32, #tpu.memory_space<vmem>>, %arg7: memref<1x128xf32, #tpu.memory_space<vmem>>, %arg8: memref<128x128xf32, #tpu.memory_space<vmem>>, %arg9: memref<1x128xf32, #tpu.memory_space<vmem>>, %arg10: memref<8x128xf32, #tpu.memory_space<vmem>>, %arg11: memref<8x128xf32, #tpu.memory_space<vmem>>) attributes {dimension_semantics = [#tpu.dimension_semantics<parallel>], iteration_bounds = array<i64: 1>, scalar_prefetch = 0 : i64, scratch_operands = 0 : i64, tpu.core_type = #tpu.core_type<tc>, window_params = [{transform_indices = @transform_0, window_bounds = array<i64: 8, 128>}, {pipeline_mode = #tpu.pipeline_mode<synchronous>, transform_indices = @transform_1, window_bounds = array<i64: 128, 128>}, {pipeline_mode = #tpu.pipeline_mode<synchronous>, transform_indices = @transform_2, window_bounds = array<i64: 1, 128>}, {pipeline_mode = #tpu.pipeline_mode<synchronous>, transform_indices = @transform_3, window_bounds = array<i64: 128, 128>}, {pipeline_mode = #tpu.pipeline_mode<synchronous>, transform_indices = @transform_4, window_bounds = array<i64: 1, 128>}, {pipeline_mode = #tpu.pipeline_mode<synchronous>, transform_indices = @transform_5, window_bounds = array<i64: 128, 128>}, {pipeline_mode = #tpu.pipeline_mode<synchronous>, transform_indices = @transform_6, window_bounds = array<i64: 1, 128>}, {pipeline_mode = #tpu.pipeline_mode<synchronous>, transform_indices = @transform_7, window_bounds = array<i64: 128, 128>}, {pipeline_mode = #tpu.pipeline_mode<synchronous>, transform_indices = @transform_8, window_bounds = array<i64: 1, 128>}, {transform_indices = @transform_9, window_bounds = array<i64: 8, 128>}, {transform_indices = @transform_10, window_bounds = array<i64: 8, 128>}]} {
    %c0 = arith.constant 0 : index
    %c0_0 = arith.constant 0 : index
    %0 = vector.load %arg1[%c0, %c0_0] : memref<8x128xf32, #tpu.memory_space<vmem>>, vector<8x128xf32>
    %c0_1 = arith.constant 0 : index
    %c0_2 = arith.constant 0 : index
    %1 = vector.load %arg2[%c0_1, %c0_2] : memref<128x128xf32, #tpu.memory_space<vmem>>, vector<128x128xf32>
    %cst = arith.constant dense<0.000000e+00> : vector<8x128xf32>
    %2 = tpu.matmul %0, %1, %cst {dimension_numbers = #tpu.dot_dimension_numbers<[1], [0], [0], [1], [0, 0, 1, 1], [], []>} : vector<8x128xf32>, vector<128x128xf32>, vector<8x128xf32> -> vector<8x128xf32>
    %c0_3 = arith.constant 0 : index
    %c0_4 = arith.constant 0 : index
    %3 = vector.load %arg3[%c0_3, %c0_4] : memref<1x128xf32, #tpu.memory_space<vmem>>, vector<1x128xf32>
    %4 = vector.broadcast %3 : vector<1x128xf32> to vector<8x128xf32>
    %5 = arith.addf %2, %4 : vector<8x128xf32>
    %cst_5 = arith.constant 0.000000e+00 : f32
    %6 = vector.broadcast %cst_5 : f32 to vector<8x128xf32>
    %7 = arith.maximumf %5, %6 : vector<8x128xf32>
    %c0_6 = arith.constant 0 : index
    %c0_7 = arith.constant 0 : index
    %8 = vector.load %arg4[%c0_6, %c0_7] : memref<128x128xf32, #tpu.memory_space<vmem>>, vector<128x128xf32>
    %cst_8 = arith.constant dense<0.000000e+00> : vector<8x128xf32>
    %9 = tpu.matmul %7, %8, %cst_8 {dimension_numbers = #tpu.dot_dimension_numbers<[1], [0], [0], [1], [0, 0, 1, 1], [], []>} : vector<8x128xf32>, vector<128x128xf32>, vector<8x128xf32> -> vector<8x128xf32>
    %c0_9 = arith.constant 0 : index
    %c0_10 = arith.constant 0 : index
    %10 = vector.load %arg5[%c0_9, %c0_10] : memref<1x128xf32, #tpu.memory_space<vmem>>, vector<1x128xf32>
    %11 = vector.broadcast %10 : vector<1x128xf32> to vector<8x128xf32>
    %12 = arith.addf %9, %11 : vector<8x128xf32>
    %cst_11 = arith.constant 0.000000e+00 : f32
    %13 = vector.broadcast %cst_11 : f32 to vector<8x128xf32>
    %14 = arith.maximumf %12, %13 : vector<8x128xf32>
    %c0_12 = arith.constant 0 : index
    %c0_13 = arith.constant 0 : index
    %15 = vector.load %arg6[%c0_12, %c0_13] : memref<128x128xf32, #tpu.memory_space<vmem>>, vector<128x128xf32>
    %cst_14 = arith.constant dense<0.000000e+00> : vector<8x128xf32>
    %16 = tpu.matmul %14, %15, %cst_14 {dimension_numbers = #tpu.dot_dimension_numbers<[1], [0], [0], [1], [0, 0, 1, 1], [], []>} : vector<8x128xf32>, vector<128x128xf32>, vector<8x128xf32> -> vector<8x128xf32>
    %c0_15 = arith.constant 0 : index
    %c0_16 = arith.constant 0 : index
    %17 = vector.load %arg7[%c0_15, %c0_16] : memref<1x128xf32, #tpu.memory_space<vmem>>, vector<1x128xf32>
    %18 = vector.broadcast %17 : vector<1x128xf32> to vector<8x128xf32>
    %19 = arith.addf %16, %18 : vector<8x128xf32>
    %cst_17 = arith.constant 0.000000e+00 : f32
    %20 = vector.broadcast %cst_17 : f32 to vector<8x128xf32>
    %21 = arith.maximumf %19, %20 : vector<8x128xf32>
    %c0_18 = arith.constant 0 : index
    %c0_19 = arith.constant 0 : index
    %22 = vector.load %arg8[%c0_18, %c0_19] : memref<128x128xf32, #tpu.memory_space<vmem>>, vector<128x128xf32>
    %cst_20 = arith.constant dense<0.000000e+00> : vector<8x128xf32>
    %23 = tpu.matmul %21, %22, %cst_20 {dimension_numbers = #tpu.dot_dimension_numbers<[1], [0], [0], [1], [0, 0, 1, 1], [], []>} : vector<8x128xf32>, vector<128x128xf32>, vector<8x128xf32> -> vector<8x128xf32>
    %c0_21 = arith.constant 0 : index
    %c0_22 = arith.constant 0 : index
    %24 = vector.load %arg9[%c0_21, %c0_22] : memref<1x128xf32, #tpu.memory_space<vmem>>, vector<1x128xf32>
    %25 = vector.broadcast %24 : vector<1x128xf32> to vector<8x128xf32>
    %26 = arith.addf %23, %25 : vector<8x128xf32>
    %27 = arith.negf %26 : vector<8x128xf32>
    %28 = math.exp %27 : vector<8x128xf32>
    %cst_23 = arith.constant 1.000000e+00 : f32
    %29 = vector.broadcast %cst_23 : f32 to vector<8x128xf32>
    %30 = arith.addf %29, %28 : vector<8x128xf32>
    %31 = arith.divf %29, %30 : vector<8x128xf32>
    %c0_24 = arith.constant 0 : index
    %c0_25 = arith.constant 0 : index
    %32 = vector.load %arg10[%c0_24, %c0_25] : memref<8x128xf32, #tpu.memory_space<vmem>>, vector<8x128xf32>
    tpu.vector_store %arg10[%c0_24, %c0_25], %31 {strides = array<i32>} : memref<8x128xf32, #tpu.memory_space<vmem>>, vector<8x128xf32>,
    %c0_26 = arith.constant 0 : index
    %c0_27 = arith.constant 0 : index
    %33 = vector.load %arg11[%c0_26, %c0_27] : memref<8x128xf32, #tpu.memory_space<vmem>>, vector<8x128xf32>
    tpu.vector_store %arg11[%c0_26, %c0_27], %14 {strides = array<i32>} : memref<8x128xf32, #tpu.memory_space<vmem>>, vector<8x128xf32>,
    return
  }
  func.func @transform_0(%arg0: i32) -> (i32, i32) {
    %c0_i32 = arith.constant 0 : i32
    %c0_i32_0 = arith.constant 0 : i32
    return %arg0, %c0_i32 : i32, i32
  }
  func.func @transform_1(%arg0: i32) -> (i32, i32) {
    %c0_i32 = arith.constant 0 : i32
    %c0_i32_0 = arith.constant 0 : i32
    %c0_i32_1 = arith.constant 0 : i32
    return %c0_i32, %c0_i32_0 : i32, i32
  }
  func.func @transform_2(%arg0: i32) -> (i32, i32) {
    %c0_i32 = arith.constant 0 : i32
    %c0_i32_0 = arith.constant 0 : i32
    %c0_i32_1 = arith.constant 0 : i32
    return %c0_i32, %c0_i32_0 : i32, i32
  }
  func.func @transform_3(%arg0: i32) -> (i32, i32) {
    %c0_i32 = arith.constant 0 : i32
    %c0_i32_0 = arith.constant 0 : i32
    %c0_i32_1 = arith.constant 0 : i32
    return %c0_i32, %c0_i32_0 : i32, i32
  }
  func.func @transform_4(%arg0: i32) -> (i32, i32) {
    %c0_i32 = arith.constant 0 : i32
    %c0_i32_0 = arith.constant 0 : i32
    %c0_i32_1 = arith.constant 0 : i32
    return %c0_i32, %c0_i32_0 : i32, i32
  }
  func.func @transform_5(%arg0: i32) -> (i32, i32) {
    %c0_i32 = arith.constant 0 : i32
    %c0_i32_0 = arith.constant 0 : i32
    %c0_i32_1 = arith.constant 0 : i32
    return %c0_i32, %c0_i32_0 : i32, i32
  }
  func.func @transform_6(%arg0: i32) -> (i32, i32) {
    %c0_i32 = arith.constant 0 : i32
    %c0_i32_0 = arith.constant 0 : i32
    %c0_i32_1 = arith.constant 0 : i32
    return %c0_i32, %c0_i32_0 : i32, i32
  }
  func.func @transform_7(%arg0: i32) -> (i32, i32) {
    %c0_i32 = arith.constant 0 : i32
    %c0_i32_0 = arith.constant 0 : i32
    %c0_i32_1 = arith.constant 0 : i32
    return %c0_i32, %c0_i32_0 : i32, i32
  }
  func.func @transform_8(%arg0: i32) -> (i32, i32) {
    %c0_i32 = arith.constant 0 : i32
    %c0_i32_0 = arith.constant 0 : i32
    %c0_i32_1 = arith.constant 0 : i32
    return %c0_i32, %c0_i32_0 : i32, i32
  }
  func.func @transform_9(%arg0: i32) -> (i32, i32) {
    %c0_i32 = arith.constant 0 : i32
    %c0_i32_0 = arith.constant 0 : i32
    return %arg0, %c0_i32 : i32, i32
  }
  func.func @transform_10(%arg0: i32) -> (i32, i32) {
    %c0_i32 = arith.constant 0 : i32
    %c0_i32_0 = arith.constant 0 : i32
    return %arg0, %c0_i32 : i32, i32
  }
}

module attributes {stable_mosaic.version = 11 : i64} {
  func.func @_ae_kernel(%arg0: i32, %arg1: memref<8x128xf32, #tpu.memory_space<vmem>>, %arg2: memref<128x128xf32, #tpu.memory_space<vmem>>, %arg3: memref<1x128xf32, #tpu.memory_space<vmem>>, %arg4: memref<128x128xf32, #tpu.memory_space<vmem>>, %arg5: memref<1x128xf32, #tpu.memory_space<vmem>>, %arg6: memref<128x128xf32, #tpu.memory_space<vmem>>, %arg7: memref<1x128xf32, #tpu.memory_space<vmem>>, %arg8: memref<128x128xf32, #tpu.memory_space<vmem>>, %arg9: memref<1x128xf32, #tpu.memory_space<vmem>>, %arg10: memref<8x128xf32, #tpu.memory_space<vmem>>, %arg11: memref<8x128xf32, #tpu.memory_space<vmem>>) attributes {dimension_semantics = [#tpu.dimension_semantics<parallel>], iteration_bounds = array<i64: 1>, scalar_prefetch = 0 : i64, scratch_operands = 0 : i64, tpu.core_type = #tpu.core_type<tc>, window_params = [{transform_indices = @transform_0, window_bounds = array<i64: 8, 128>}, {pipeline_mode = #tpu.pipeline_mode<synchronous>, transform_indices = @transform_1, window_bounds = array<i64: 128, 128>}, {pipeline_mode = #tpu.pipeline_mode<synchronous>, transform_indices = @transform_2, window_bounds = array<i64: 1, 128>}, {pipeline_mode = #tpu.pipeline_mode<synchronous>, transform_indices = @transform_3, window_bounds = array<i64: 128, 128>}, {pipeline_mode = #tpu.pipeline_mode<synchronous>, transform_indices = @transform_4, window_bounds = array<i64: 1, 128>}, {pipeline_mode = #tpu.pipeline_mode<synchronous>, transform_indices = @transform_5, window_bounds = array<i64: 128, 128>}, {pipeline_mode = #tpu.pipeline_mode<synchronous>, transform_indices = @transform_6, window_bounds = array<i64: 1, 128>}, {pipeline_mode = #tpu.pipeline_mode<synchronous>, transform_indices = @transform_7, window_bounds = array<i64: 128, 128>}, {pipeline_mode = #tpu.pipeline_mode<synchronous>, transform_indices = @transform_8, window_bounds = array<i64: 1, 128>}, {transform_indices = @transform_9, window_bounds = array<i64: 8, 128>}, {transform_indices = @transform_10, window_bounds = array<i64: 8, 128>}]} {
    %c0 = arith.constant 0 : index
    %c0_0 = arith.constant 0 : index
    %0 = vector.load %arg1[%c0, %c0_0] : memref<8x128xf32, #tpu.memory_space<vmem>>, vector<8x128xf32>
    %c0_1 = arith.constant 0 : index
    %c0_2 = arith.constant 0 : index
    %1 = vector.load %arg2[%c0_1, %c0_2] : memref<128x128xf32, #tpu.memory_space<vmem>>, vector<128x128xf32>
    %cst = arith.constant dense<0.000000e+00> : vector<8x128xf32>
    %2 = tpu.matmul %0, %1, %cst {dimension_numbers = #tpu.dot_dimension_numbers<[1], [0], [0], [1], [0, 0, 1, 1], [], []>} : vector<8x128xf32>, vector<128x128xf32>, vector<8x128xf32> -> vector<8x128xf32>
    %c0_3 = arith.constant 0 : index
    %c0_4 = arith.constant 0 : index
    %3 = vector.load %arg3[%c0_3, %c0_4] : memref<1x128xf32, #tpu.memory_space<vmem>>, vector<1x128xf32>
    %4 = vector.broadcast %3 : vector<1x128xf32> to vector<8x128xf32>
    %5 = arith.addf %2, %4 : vector<8x128xf32>
    %cst_5 = arith.constant 0.000000e+00 : f32
    %6 = vector.broadcast %cst_5 : f32 to vector<8x128xf32>
    %7 = arith.maximumf %5, %6 : vector<8x128xf32>
    %c0_6 = arith.constant 0 : index
    %c0_7 = arith.constant 0 : index
    %8 = vector.load %arg4[%c0_6, %c0_7] : memref<128x128xf32, #tpu.memory_space<vmem>>, vector<128x128xf32>
    %cst_8 = arith.constant dense<0.000000e+00> : vector<8x128xf32>
    %9 = tpu.matmul %7, %8, %cst_8 {dimension_numbers = #tpu.dot_dimension_numbers<[1], [0], [0], [1], [0, 0, 1, 1], [], []>} : vector<8x128xf32>, vector<128x128xf32>, vector<8x128xf32> -> vector<8x128xf32>
    %c0_9 = arith.constant 0 : index
    %c0_10 = arith.constant 0 : index
    %10 = vector.load %arg5[%c0_9, %c0_10] : memref<1x128xf32, #tpu.memory_space<vmem>>, vector<1x128xf32>
    %11 = vector.broadcast %10 : vector<1x128xf32> to vector<8x128xf32>
    %12 = arith.addf %9, %11 : vector<8x128xf32>
    %cst_11 = arith.constant 0.000000e+00 : f32
    %13 = vector.broadcast %cst_11 : f32 to vector<8x128xf32>
    %14 = arith.maximumf %12, %13 : vector<8x128xf32>
    %c0_12 = arith.constant 0 : index
    %c0_13 = arith.constant 0 : index
    %15 = vector.load %arg6[%c0_12, %c0_13] : memref<128x128xf32, #tpu.memory_space<vmem>>, vector<128x128xf32>
    %cst_14 = arith.constant dense<0.000000e+00> : vector<8x128xf32>
    %16 = tpu.matmul %14, %15, %cst_14 {dimension_numbers = #tpu.dot_dimension_numbers<[1], [0], [0], [1], [0, 0, 1, 1], [], []>} : vector<8x128xf32>, vector<128x128xf32>, vector<8x128xf32> -> vector<8x128xf32>
    %c0_15 = arith.constant 0 : index
    %c0_16 = arith.constant 0 : index
    %17 = vector.load %arg7[%c0_15, %c0_16] : memref<1x128xf32, #tpu.memory_space<vmem>>, vector<1x128xf32>
    %18 = vector.broadcast %17 : vector<1x128xf32> to vector<8x128xf32>
    %19 = arith.addf %16, %18 : vector<8x128xf32>
    %cst_17 = arith.constant 0.000000e+00 : f32
    %20 = vector.broadcast %cst_17 : f32 to vector<8x128xf32>
    %21 = arith.maximumf %19, %20 : vector<8x128xf32>
    %c0_18 = arith.constant 0 : index
    %c0_19 = arith.constant 0 : index
    %22 = vector.load %arg8[%c0_18, %c0_19] : memref<128x128xf32, #tpu.memory_space<vmem>>, vector<128x128xf32>
    %cst_20 = arith.constant dense<0.000000e+00> : vector<8x128xf32>
    %23 = tpu.matmul %21, %22, %cst_20 {dimension_numbers = #tpu.dot_dimension_numbers<[1], [0], [0], [1], [0, 0, 1, 1], [], []>} : vector<8x128xf32>, vector<128x128xf32>, vector<8x128xf32> -> vector<8x128xf32>
    %c0_21 = arith.constant 0 : index
    %c0_22 = arith.constant 0 : index
    %24 = vector.load %arg9[%c0_21, %c0_22] : memref<1x128xf32, #tpu.memory_space<vmem>>, vector<1x128xf32>
    %25 = vector.broadcast %24 : vector<1x128xf32> to vector<8x128xf32>
    %26 = arith.addf %23, %25 : vector<8x128xf32>
    %27 = arith.negf %26 : vector<8x128xf32>
    %28 = math.exp %27 : vector<8x128xf32>
    %cst_23 = arith.constant 1.000000e+00 : f32
    %29 = vector.broadcast %cst_23 : f32 to vector<8x128xf32>
    %30 = arith.addf %29, %28 : vector<8x128xf32>
    %31 = arith.divf %29, %30 : vector<8x128xf32>
    %c0_24 = arith.constant 0 : index
    %c0_25 = arith.constant 0 : index
    %32 = vector.load %arg10[%c0_24, %c0_25] : memref<8x128xf32, #tpu.memory_space<vmem>>, vector<8x128xf32>
    tpu.vector_store %arg10[%c0_24, %c0_25], %31 {strides = array<i32>} : memref<8x128xf32, #tpu.memory_space<vmem>>, vector<8x128xf32>,
    %c0_26 = arith.constant 0 : index
    %c0_27 = arith.constant 0 : index
    %33 = vector.load %arg11[%c0_26, %c0_27] : memref<8x128xf32, #tpu.memory_space<vmem>>, vector<8x128xf32>
    tpu.vector_store %arg11[%c0_26, %c0_27], %14 {strides = array<i32>} : memref<8x128xf32, #tpu.memory_space<vmem>>, vector<8x128xf32>,
    return
  }
  func.func @transform_0(%arg0: i32) -> (i32, i32) {
    %c0_i32 = arith.constant 0 : i32
    %c0_i32_0 = arith.constant 0 : i32
    return %arg0, %c0_i32 : i32, i32
  }
  func.func @transform_1(%arg0: i32) -> (i32, i32) {
    %c0_i32 = arith.constant 0 : i32
    %c0_i32_0 = arith.constant 0 : i32
    %c0_i32_1 = arith.constant 0 : i32
    return %c0_i32, %c0_i32_0 : i32, i32
  }
  func.func @transform_2(%arg0: i32) -> (i32, i32) {
    %c0_i32 = arith.constant 0 : i32
    %c0_i32_0 = arith.constant 0 : i32
    %c0_i32_1 = arith.constant 0 : i32
    return %c0_i32, %c0_i32_0 : i32, i32
  }
  func.func @transform_3(%arg0: i32) -> (i32, i32) {
    %c0_i32 = arith.constant 0 : i32
    %c0_i32_0 = arith.constant 0 : i32
    %c0_i32_1 = arith.constant 0 : i32
    return %c0_i32, %c0_i32_0 : i32, i32
  }
  func.func @transform_4(%arg0: i32) -> (i32, i32) {
    %c0_i32 = arith.constant 0 : i32
    %c0_i32_0 = arith.constant 0 : i32
    %c0_i32_1 = arith.constant 0 : i32
    return %c0_i32, %c0_i32_0 : i32, i32
  }
  func.func @transform_5(%arg0: i32) -> (i32, i32) {
    %c0_i32 = arith.constant 0 : i32
    %c0_i32_0 = arith.constant 0 : i32
    %c0_i32_1 = arith.constant 0 : i32
    return %c0_i32, %c0_i32_0 : i32, i32
  }
  func.func @transform_6(%arg0: i32) -> (i32, i32) {
    %c0_i32 = arith.constant 0 : i32
    %c0_i32_0 = arith.constant 0 : i32
    %c0_i32_1 = arith.constant 0 : i32
    return %c0_i32, %c0_i32_0 : i32, i32
  }
  func.func @transform_7(%arg0: i32) -> (i32, i32) {
    %c0_i32 = arith.constant 0 : i32
    %c0_i32_0 = arith.constant 0 : i32
    %c0_i32_1 = arith.constant 0 : i32
    return %c0_i32, %c0_i32_0 : i32, i32
  }
  func.func @transform_8(%arg0: i32) -> (i32, i32) {
    %c0_i32 = arith.constant 0 : i32
    %c0_i32_0 = arith.constant 0 : i32
    %c0_i32_1 = arith.constant 0 : i32
    return %c0_i32, %c0_i32_0 : i32, i32
  }
  func.func @transform_9(%arg0: i32) -> (i32, i32) {
    %c0_i32 = arith.constant 0 : i32
    %c0_i32_0 = arith.constant 0 : i32
    return %arg0, %c0_i32 : i32, i32
  }
  func.func @transform_10(%arg0: i32) -> (i32, i32) {
    %c0_i32 = arith.constant 0 : i32
    %c0_i32_0 = arith.constant 0 : i32
    return %arg0, %c0_i32 : i32, i32
  }
}

</mosaic_0001>

<bundles_post_ra>
// kernel: tpu_custom_call.1
= control target key start
LH: loop header
LB: loop body
LE: loop exit
PB: predicated region body
PF: predicated region fallthrough
CT: control target
= control target key end

     0   :  { %16 = vsyncpa [#allocation3], 0  ;;  %s1078_s0 = inlined_call_operand.hbm [shape: f32[8,128], index: 0, kind: input, shape index: {}]   ;;  %s1079_s1 = inlined_call_operand.hbm [shape: f32[128,128], index: 1, kind: input, shape index: {}]   ;;  %s1080_s2 = inlined_call_operand.vmem [shape: f32[1,128], index: 2, kind: input, shape index: {}]   ;;  %s1081_s3 = inlined_call_operand.hbm [shape: f32[128,128], index: 3, kind: input, shape index: {}]   ;;  %s1082_s4 = inlined_call_operand.vmem [shape: f32[1,128], index: 4, kind: input, shape index: {}]   ;;  %s1083_s5 = inlined_call_operand.hbm [shape: f32[128,128], index: 5, kind: input, shape index: {}]   ;;  %s1084_s6 = inlined_call_operand.vmem [shape: f32[1,128], index: 6, kind: input, shape index: {}]   ;;  %s1085_s7 = inlined_call_operand.hbm [shape: f32[128,128], index: 7, kind: input, shape index: {}]   ;;  %s1086_s8 = inlined_call_operand.vmem [shape: f32[1,128], index: 8, kind: input, shape index: {}]   ;;  %s1087_s9 = inlined_call_operand.hbm [shape: f32[8,128], index: 9, kind: output, shape index: {0}]   ;;  %s1088_s10 = inlined_call_operand.hbm [shape: f32[8,128], index: 10, kind: output, shape index: {1}]  }
   0x1   :  { %17 = vsyncpa [#allocation6], 0 }
   0x2   :  { %18 = vsyncpa [#allocation9], 0 }
   0x3   :  { %19 = vsyncpa [#allocation4], 0 }
   0x4   :  { %20 = vsyncpa [#allocation13], 0  ;;  %s895_s13 = smov [#allocation5]  }
   0x5   :  { %s36_s14 = sshll.u32 %s895_s13, 4  ;;  %s37_s14 = int_to_ptr.vmem [resolvable:$true] %s36_s14 }
   0x6   :  { %s753_s15 = scalar_lea.vmem %s37_s14, 2048  ;;  %p758_p1 = scmp.lt.s32.totalorder %s37_s14, %s37_s14 }
   0x7   :  { %p754_p0 = scmp.ne.s32.totalorder %s37_s14, %s753_s15  ;;  %p759_p2 = scmp.lt.s32.totalorder %s753_s15, %s753_s15 }
   0x9   :  { %p760_p3 = por %p759_p2, %p758_p1 }
   0xb   :  { %p761_p4 = pnand %p760_p3, %p754_p0 }
   0xd   :  { %764 = shalt.err (!%p761_p4)
}
   0xe   :  { %s896_s16 = smov 128   ;;  %s897_s17 = smov 8  }
   0xf   :  { %42 = dma.hbm_to_vmem [thread:$0]  %s1079_s1, 2048, %s37_s14, [#allocation6], %s896_s16, %s896_s16, %s897_s17  }
  0x10   :  { %s898_s20 = smov [#allocation8]   ;;  %s899_s22 = smov [#allocation2]  }
  0x11   :  { %s64_s21 = sshll.u32 %s898_s20, 4  ;;  %s27_s23 = sshll.u32 %s899_s22, 4  ;;  %s65_s21 = int_to_ptr.vmem [resolvable:$true] %s64_s21  ;;  %s28_s23 = int_to_ptr.vmem [resolvable:$true] %s27_s23 }
  0x12   :  { %s773_s24 = scalar_lea.vmem %s65_s21, 2048  ;;  %p778_p6 = scmp.lt.s32.totalorder %s65_s21, %s65_s21 }
  0x13   :  { %p774_p5 = scmp.ne.s32.totalorder %s65_s21, %s773_s24  ;;  %p779_p7 = scmp.lt.s32.totalorder %s773_s24, %s773_s24 }
  0x15   :  { %p780_p8 = por %p779_p7, %p778_p6 }
  0x17   :  { %p781_p9 = pnand %p780_p8, %p774_p5 }
  0x19   :  { %784 = shalt.err (!%p781_p9)
}
  0x1a   :  { %70 = dma.hbm_to_vmem [thread:$0]  %s1083_s5, 2048, %s65_s21, [#allocation9], %s896_s16, %s896_s16, %s897_s17  }
  0x1b   :  { %s793_s1 = scalar_lea.vmem %s28_s23, 128  ;;  %p798_p11 = scmp.lt.s32.totalorder %s28_s23, %s28_s23 }
  0x1c   :  { %p794_p10 = scmp.ne.s32.totalorder %s28_s23, %s793_s1  ;;  %p799_p12 = scmp.lt.s32.totalorder %s793_s1, %s793_s1 }
  0x1e   :  { %p800_p13 = por %p799_p12, %p798_p11 }
  0x20   :  { %p801_p0 = pnand %p800_p13, %p794_p10 }
  0x22   :  { %804 = shalt.err (!%p801_p0)
}
  0x23   :  { %30 = dma.hbm_to_vmem [thread:$0]  %s1078_s0, 128, %s28_s23, [#allocation3]  }
  0x24   :  { %s900_s29 = smov [#allocation7]   ;;  %s901_s11 = smov [#allocation10]  }
  0x25   :  { %s50_s30 = sshll.u32 %s900_s29, 4  ;;  %s78_s12 = sshll.u32 %s901_s11, 4  ;;  %s51_s30 = int_to_ptr.vmem [resolvable:$true] %s50_s30  ;;  %s79_s12 = int_to_ptr.vmem [resolvable:$true] %s78_s12 }
  0x26   :  { %s813_s13 = scalar_lea.vmem %s51_s30, 2048  ;;  %p818_p2 = scmp.lt.s32.totalorder %s51_s30, %s51_s30 }
  0x27   :  { %p814_p1 = scmp.ne.s32.totalorder %s51_s30, %s813_s13  ;;  %p819_p3 = scmp.lt.s32.totalorder %s813_s13, %s813_s13 }
  0x29   :  { %p820_p4 = por %p819_p3, %p818_p2 }
  0x2b   :  { %p821_p5 = pnand %p820_p4, %p814_p1 }
  0x2d   :  { %824 = shalt.err (!%p821_p5)
}
  0x2e   :  { %56 = dma.hbm_to_vmem [thread:$0]  %s1081_s3, 2048, %s51_s30, [#allocation6], %s896_s16, %s896_s16, %s897_s17  }
  0x2f   :  { %s833_s0 = scalar_lea.vmem %s79_s12, 2048  ;;  %p838_p7 = scmp.lt.s32.totalorder %s79_s12, %s79_s12 }
  0x30   :  { %p834_p6 = scmp.ne.s32.totalorder %s79_s12, %s833_s0  ;;  %p839_p8 = scmp.lt.s32.totalorder %s833_s0, %s833_s0 }
  0x32   :  { %p840_p9 = por %p839_p8, %p838_p7 }
  0x34   :  { %p841_p10 = pnand %p840_p9, %p834_p6 }
  0x36   :  { %844 = shalt.err (!%p841_p10)
}
  0x37   :  { %84 = dma.hbm_to_vmem [thread:$0]  %s1085_s7, 2048, %s79_s12, [#allocation9], %s896_s16, %s896_s16, %s897_s17  }
  0x38   :  { %885 = dma.done.wait [#allocation3], 128  }
  0x39   :  { %886 = vsyncadd [#allocation3], 4294967168 }
  0x3a   :  { %887 = dma.done.wait [#allocation6], 4096  }
  0x3b   :  { %888 = vsyncadd [#allocation6], 4294963200 }
  0x3c   :  { %889 = dma.done.wait [#allocation9], 4096  }
  0x3d   :  { %890 = vsyncadd [#allocation9], 4294963200  ;;  %v902_v0 = vmov 0.0   ;;  %vm903_vm0 = vmmov 0   ;;  %v118_v1 = vld [vmem:[#allocation5 + $0x78] sm:$0xff]  ;;  %v117_v2 = vld [vmem:[#allocation5 + $0x70] sm:$0xff] }
  0x3e   :  { %590 = vmatprep.subr.mxu0 %v902_v0  ;;  %622 = vmatprep.mubr.msk.f32.mxu0 %vm903_vm0, %v902_v0  ;;  %v116_v3 = vld [vmem:[#allocation5 + $0x68] sm:$0xff]  ;;  %v115_v4 = vld [vmem:[#allocation5 + $0x60] sm:$0xff]  ;;  %v212_v5 = vld [vmem:[#allocation7 + $0x78] sm:$0xff] }
  0x3f   :  { %625 = vmatprep.subr.mxu1 %v902_v0  ;;  %657 = vmatprep.mubr.msk.f32.mxu1 %vm903_vm0, %v902_v0  ;;  %v114_v6 = vld [vmem:[#allocation5 + $0x58] sm:$0xff]  ;;  %v211_v7 = vld [vmem:[#allocation7 + $0x70] sm:$0xff]  ;;  %v210_v8 = vld [vmem:[#allocation7 + $0x68] sm:$0xff] }
  0x40   :  { %591 = vmatpush3.msra.mxu0 %v118_v1  ;;  %626 = vmatpush3.msra.mxu1 %v212_v5  ;;  %v113_v9 = vld [vmem:[#allocation5 + $0x50] sm:$0xff]  ;;  %v209_v10 = vld [vmem:[#allocation7 + $0x60] sm:$0xff]  ;;  %v112_v11 = vld [vmem:[#allocation5 + $0x48] sm:$0xff] }
  0x41   :  { %592 = vmatprep.subr.mxu0 %v902_v0  ;;  %627 = vmatprep.subr.mxu1 %v902_v0  ;;  %v208_v12 = vld [vmem:[#allocation7 + $0x58] sm:$0xff]  ;;  %v111_v13 = vld [vmem:[#allocation5 + $0x40] sm:$0xff]  ;;  %v207_v14 = vld [vmem:[#allocation7 + $0x50] sm:$0xff] }
  0x42   :  { %593 = vmatpush3.msra.mxu0 %v117_v2  ;;  %628 = vmatpush3.msra.mxu1 %v211_v7  ;;  %v110_v15 = vld [vmem:[#allocation5 + $0x38] sm:$0xff]  ;;  %v206_v16 = vld [vmem:[#allocation7 + $0x48] sm:$0xff]  ;;  %v109_v17 = vld [vmem:[#allocation5 + $0x30] sm:$0xff] }
  0x43   :  { %594 = vmatprep.subr.mxu0 %v902_v0  ;;  %629 = vmatprep.subr.mxu1 %v902_v0  ;;  %v205_v18 = vld [vmem:[#allocation7 + $0x40] sm:$0xff]  ;;  %v108_v19 = vld [vmem:[#allocation5 + $0x28] sm:$0xff]  ;;  %v204_v20 = vld [vmem:[#allocation7 + $0x38] sm:$0xff] }
  0x44   :  { %595 = vmatpush3.msra.mxu0 %v116_v3  ;;  %630 = vmatpush3.msra.mxu1 %v210_v8  ;;  %v107_v21 = vld [vmem:[#allocation5 + $0x20] sm:$0xff]  ;;  %v203_v22 = vld [vmem:[#allocation7 + $0x30] sm:$0xff]  ;;  %v106_v23 = vld [vmem:[#allocation5 + $0x18] sm:$0xff] }
  0x45   :  { %596 = vmatprep.subr.mxu0 %v902_v0  ;;  %631 = vmatprep.subr.mxu1 %v902_v0  ;;  %v202_v24 = vld [vmem:[#allocation7 + $0x28] sm:$0xff]  ;;  %v105_v25 = vld [vmem:[#allocation5 + $0x10] sm:$0xff]  ;;  %v201_v26 = vld [vmem:[#allocation7 + $0x20] sm:$0xff] }
  0x46   :  { %597 = vmatpush3.msra.mxu0 %v115_v4  ;;  %632 = vmatpush3.msra.mxu1 %v209_v10  ;;  %v104_v27 = vld [vmem:[#allocation5 + $0x8] sm:$0xff]  ;;  %v200_v28 = vld [vmem:[#allocation7 + $0x18] sm:$0xff]  ;;  %v103_v29 = vld [vmem:[#allocation5] sm:$0xff] }
  0x47   :  { %598 = vmatprep.subr.mxu0 %v902_v0  ;;  %633 = vmatprep.subr.mxu1 %v902_v0  ;;  %v102_v30 = vld [vmem:[#allocation2] sm:$0xff]  ;;  %v199_v31 = vld [vmem:[#allocation7 + $0x10] sm:$0xff]  ;;  %v198_v32 = vld [vmem:[#allocation7 + $0x8] sm:$0xff] }
  0x48   :  { %599 = vmatpush3.msra.mxu0 %v114_v6  ;;  %634 = vmatpush3.msra.mxu1 %v208_v12  ;;  %v197_v33 = vld [vmem:[#allocation7] sm:$0xff]  ;;  %v306_v34 = vld [vmem:[#allocation8 + $0x78] sm:$0xff]  ;;  %v305_v35 = vld [vmem:[#allocation8 + $0x70] sm:$0xff] }
  0x49   :  { %600 = vmatprep.subr.mxu0 %v902_v0  ;;  %635 = vmatprep.subr.mxu1 %v902_v0  ;;  %v304_v36 = vld [vmem:[#allocation8 + $0x68] sm:$0xff]  ;;  %v303_v37 = vld [vmem:[#allocation8 + $0x60] sm:$0xff]  ;;  %v302_v38 = vld [vmem:[#allocation8 + $0x58] sm:$0xff] }
  0x4a   :  { %601 = vmatpush3.msra.mxu0 %v113_v9  ;;  %636 = vmatpush3.msra.mxu1 %v207_v14  ;;  %v301_v39 = vld [vmem:[#allocation8 + $0x50] sm:$0xff]  ;;  %v300_v40 = vld [vmem:[#allocation8 + $0x48] sm:$0xff]  ;;  %v299_v41 = vld [vmem:[#allocation8 + $0x40] sm:$0xff] }
  0x4b   :  { %602 = vmatprep.subr.mxu0 %v902_v0  ;;  %637 = vmatprep.subr.mxu1 %v902_v0  ;;  %v298_v42 = vld [vmem:[#allocation8 + $0x38] sm:$0xff]  ;;  %v297_v43 = vld [vmem:[#allocation8 + $0x30] sm:$0xff]  ;;  %v296_v44 = vld [vmem:[#allocation8 + $0x28] sm:$0xff] }
  0x4c   :  { %603 = vmatpush3.msra.mxu0 %v112_v11  ;;  %638 = vmatpush3.msra.mxu1 %v206_v16  ;;  %v295_v45 = vld [vmem:[#allocation8 + $0x20] sm:$0xff]  ;;  %v294_v46 = vld [vmem:[#allocation8 + $0x18] sm:$0xff]  ;;  %v293_v52 = vld [vmem:[#allocation8 + $0x10] sm:$0xff] }
  0x4d   :  { %604 = vmatprep.subr.mxu0 %v902_v0  ;;  %639 = vmatprep.subr.mxu1 %v902_v0  ;;  %v517_v47 = vld [vmem:[%s1080_s2] ss:$0 sm:$0xff]  ;;  %v292_v53 = vld [vmem:[#allocation8 + $0x8] sm:$0xff]  ;;  %v291_v54 = vld [vmem:[#allocation8] sm:$0xff] }
  0x4e   :  { %605 = vmatpush3.msra.mxu0 %v111_v13  ;;  %640 = vmatpush3.msra.mxu1 %v205_v18  ;;  %v400_v55 = vld [vmem:[#allocation10 + $0x78] sm:$0xff]  ;;  %v399_v56 = vld [vmem:[#allocation10 + $0x70] sm:$0xff]  ;;  %v398_v57 = vld [vmem:[#allocation10 + $0x68] sm:$0xff] }
  0x4f   :  { %606 = vmatprep.subr.mxu0 %v902_v0  ;;  %641 = vmatprep.subr.mxu1 %v902_v0  ;;  %v397_v58 = vld [vmem:[#allocation10 + $0x60] sm:$0xff]  ;;  %v396_v59 = vld [vmem:[#allocation10 + $0x58] sm:$0xff]  ;;  %v395_v60 = vld [vmem:[#allocation10 + $0x50] sm:$0xff] }
  0x50   :  { %607 = vmatpush3.msra.mxu0 %v110_v15  ;;  %642 = vmatpush3.msra.mxu1 %v204_v20  ;;  %v394_v61 = vld [vmem:[#allocation10 + $0x48] sm:$0xff]  ;;  %v393_v62 = vld [vmem:[#allocation10 + $0x40] sm:$0xff]  ;;  %v392_v63 = vld [vmem:[#allocation10 + $0x38] sm:$0xff] }
  0x51   :  { %608 = vmatprep.subr.mxu0 %v902_v0  ;;  %643 = vmatprep.subr.mxu1 %v902_v0  ;;  %v391_v1 = vld [vmem:[#allocation10 + $0x30] sm:$0xff]  ;;  %v390_v2 = vld [vmem:[#allocation10 + $0x28] sm:$0xff]  ;;  %v389_v3 = vld [vmem:[#allocation10 + $0x20] sm:$0xff] }
  0x52   :  { %609 = vmatpush3.msra.mxu0 %v109_v17  ;;  %644 = vmatpush3.msra.mxu1 %v203_v22  ;;  %v388_v4 = vld [vmem:[#allocation10 + $0x18] sm:$0xff]  ;;  %v387_v10 = vld [vmem:[#allocation10 + $0x10] sm:$0xff]  ;;  %v386_v11 = vld [vmem:[#allocation10 + $0x8] sm:$0xff] }
  0x53   :  { %610 = vmatprep.subr.mxu0 %v902_v0  ;;  %645 = vmatprep.subr.mxu1 %v902_v0  ;;  %v518_v5 = vld [vmem:[%s1082_s4] ss:$0 sm:$0xff]  ;;  %v385_v12 = vld [vmem:[#allocation10] sm:$0xff]  ;;  %s904_s4 = smov [#allocation12]  }
  0x54   :  { %611 = vmatpush3.msra.mxu0 %v108_v19  ;;  %646 = vmatpush3.msra.mxu1 %v202_v24  ;;  %v519_v13 = vld [vmem:[%s1084_s6] ss:$0 sm:$0xff]  ;;  %s502_s20 = sshll.u32 %s904_s4, 4  ;;  %s503_s20 = int_to_ptr.vmem [resolvable:$true] %s502_s20 }
  0x55   :  { %612 = vmatprep.subr.mxu0 %v902_v0  ;;  %647 = vmatprep.subr.mxu1 %v902_v0  ;;  %s845_s21 = scalar_lea.vmem %s503_s20, 128  ;;  %p850_p12 = scmp.lt.s32.totalorder %s503_s20, %s503_s20 }
  0x56   :  { %613 = vmatpush3.msra.mxu0 %v107_v21  ;;  %648 = vmatpush3.msra.mxu1 %v201_v26  ;;  %p846_p11 = scmp.ne.s32.totalorder %s503_s20, %s845_s21  ;;  %p851_p13 = scmp.lt.s32.totalorder %s845_s21, %s845_s21 }
  0x57   :  { %614 = vmatprep.subr.mxu0 %v902_v0  ;;  %649 = vmatprep.subr.mxu1 %v902_v0 }
  0x58   :  { %615 = vmatpush3.msra.mxu0 %v106_v23  ;;  %650 = vmatpush3.msra.mxu1 %v200_v28  ;;  %p852_p0 = por %p851_p13, %p850_p12 }
  0x59   :  { %616 = vmatprep.subr.mxu0 %v902_v0  ;;  %651 = vmatprep.subr.mxu1 %v902_v0 }
  0x5a   :  { %617 = vmatpush3.msra.mxu0 %v105_v25  ;;  %652 = vmatpush3.msra.mxu1 %v199_v31  ;;  %p853_p1 = pnand %p852_p0, %p846_p11 }
  0x5b   :  { %618 = vmatprep.subr.mxu0 %v902_v0  ;;  %653 = vmatprep.subr.mxu1 %v902_v0 }
  0x5c   :  { %619 = vmatpush3.msra.mxu0 %v104_v27  ;;  %654 = vmatpush3.msra.mxu1 %v198_v32 }
  0x5d   :  { %620 = vmatprep.subr.mxu0 %v902_v0  ;;  %655 = vmatprep.subr.mxu1 %v902_v0 }
  0x5e   :  { %621 = vmatpush3.msra.mxu0 %v103_v29  ;;  %656 = vmatpush3.msra.mxu1 %v197_v33 }
  0x5f   :  { %623 = vmatmul.mubr.f32.vlgmr.msra.gmra.mxu0 %v102_v30  ;;  %660 = vmatprep.subr.mxu0 %v902_v0 }
  0x60   :  { %692 = vmatprep.mubr.msk.f32.mxu0 %vm903_vm0, %v902_v0  ;;  %695 = vmatprep.subr.mxu1 %v902_v0 }
  0x61   :  { %661 = vmatpush3.msra.mxu0 %v306_v34 }
  0x62   :  { %662 = vmatprep.subr.mxu0 %v902_v0 }
  0x63   :  { %663 = vmatpush3.msra.mxu0 %v305_v35 }
  0x64   :  { %664 = vmatprep.subr.mxu0 %v902_v0 }
  0x65   :  { %665 = vmatpush3.msra.mxu0 %v304_v36 }
  0x66   :  { %666 = vmatprep.subr.mxu0 %v902_v0 }
  0x67   :  { %667 = vmatpush3.msra.mxu0 %v303_v37 }
  0x68   :  { %668 = vmatprep.subr.mxu0 %v902_v0 }
  0x69   :  { %669 = vmatpush3.msra.mxu0 %v302_v38 }
  0x6a   :  { %670 = vmatprep.subr.mxu0 %v902_v0 }
  0x6b   :  { %671 = vmatpush3.msra.mxu0 %v301_v39 }
  0x6c   :  { %672 = vmatprep.subr.mxu0 %v902_v0 }
  0x6d   :  { %673 = vmatpush3.msra.mxu0 %v300_v40 }
  0x6e   :  { %674 = vmatprep.subr.mxu0 %v902_v0 }
  0x6f   :  { %675 = vmatpush3.msra.mxu0 %v299_v41 }
  0x70   :  { %676 = vmatprep.subr.mxu0 %v902_v0 }
  0x71   :  { %677 = vmatpush3.msra.mxu0 %v298_v42 }
  0x72   :  { %678 = vmatprep.subr.mxu0 %v902_v0 }
  0x73   :  { %679 = vmatpush3.msra.mxu0 %v297_v43 }
  0x74   :  { %680 = vmatprep.subr.mxu0 %v902_v0 }
  0x75   :  { %681 = vmatpush3.msra.mxu0 %v296_v44 }
  0x76   :  { %682 = vmatprep.subr.mxu0 %v902_v0 }
  0x77   :  { %683 = vmatpush3.msra.mxu0 %v295_v45 }
  0x78   :  { %684 = vmatprep.subr.mxu0 %v902_v0 }
  0x79   :  { %685 = vmatpush3.msra.mxu0 %v294_v46 }
  0x7a   :  { %686 = vmatprep.subr.mxu0 %v902_v0 }
  0x7b   :  { %687 = vmatpush3.msra.mxu0 %v293_v52 }
  0x7c   :  { %688 = vmatprep.subr.mxu0 %v902_v0 }
  0x7d   :  { %689 = vmatpush3.msra.mxu0 %v292_v53 }
  0x7e   :  { %690 = vmatprep.subr.mxu0 %v902_v0 }
  0x7f   :  { %691 = vmatpush3.msra.mxu0 %v291_v54 }
 0x11f   :  { %v192_v48 = vpop.f32.mrf.mxu0 }
 0x120   :  { %v193_v49 = vadd.f32 %v517_v47, %v192_v48 }
 0x121   :  { %v624_v50 = vpop.f32.mrf.mxu0 }
 0x122   :  { %v196_v51 = vmax.f32 %v193_v49, 0.0 }
 0x124   :  { %658 = vmatmul.mubr.f32.vlgmr.msra.gmra.mxu1 %v196_v51 }
 0x125   :  { %727 = vmatprep.mubr.msk.f32.mxu1 %vm903_vm0, %v902_v0  ;;  %696 = vmatpush3.msra.mxu1 %v400_v55 }
 0x126   :  { %697 = vmatprep.subr.mxu1 %v902_v0 }
 0x127   :  { %698 = vmatpush3.msra.mxu1 %v399_v56 }
 0x128   :  { %699 = vmatprep.subr.mxu1 %v902_v0 }
 0x129   :  { %700 = vmatpush3.msra.mxu1 %v398_v57 }
 0x12a   :  { %701 = vmatprep.subr.mxu1 %v902_v0 }
 0x12b   :  { %702 = vmatpush3.msra.mxu1 %v397_v58 }
 0x12c   :  { %703 = vmatprep.subr.mxu1 %v902_v0 }
 0x12d   :  { %704 = vmatpush3.msra.mxu1 %v396_v59 }
 0x12e   :  { %705 = vmatprep.subr.mxu1 %v902_v0 }
 0x12f   :  { %706 = vmatpush3.msra.mxu1 %v395_v60 }
 0x130   :  { %707 = vmatprep.subr.mxu1 %v902_v0 }
 0x131   :  { %708 = vmatpush3.msra.mxu1 %v394_v61 }
 0x132   :  { %709 = vmatprep.subr.mxu1 %v902_v0 }
 0x133   :  { %710 = vmatpush3.msra.mxu1 %v393_v62 }
 0x134   :  { %711 = vmatprep.subr.mxu1 %v902_v0 }
 0x135   :  { %712 = vmatpush3.msra.mxu1 %v392_v63 }
 0x136   :  { %713 = vmatprep.subr.mxu1 %v902_v0 }
 0x137   :  { %714 = vmatpush3.msra.mxu1 %v391_v1 }
 0x138   :  { %715 = vmatprep.subr.mxu1 %v902_v0 }
 0x139   :  { %716 = vmatpush3.msra.mxu1 %v390_v2 }
 0x13a   :  { %717 = vmatprep.subr.mxu1 %v902_v0 }
 0x13b   :  { %718 = vmatpush3.msra.mxu1 %v389_v3 }
 0x13c   :  { %719 = vmatprep.subr.mxu1 %v902_v0 }
 0x13d   :  { %720 = vmatpush3.msra.mxu1 %v388_v4 }
 0x13e   :  { %721 = vmatprep.subr.mxu1 %v902_v0 }
 0x13f   :  { %722 = vmatpush3.msra.mxu1 %v387_v10 }
 0x140   :  { %723 = vmatprep.subr.mxu1 %v902_v0 }
 0x141   :  { %724 = vmatpush3.msra.mxu1 %v386_v11 }
 0x142   :  { %725 = vmatprep.subr.mxu1 %v902_v0 }
 0x143   :  { %726 = vmatpush3.msra.mxu1 %v385_v12 }
 0x1e4   :  { %v286_v6 = vpop.f32.mrf.mxu1 }
 0x1e5   :  { %v287_v7 = vadd.f32 %v518_v5, %v286_v6 }
 0x1e6   :  { %v659_v8 = vpop.f32.mrf.mxu1 }
 0x1e7   :  { %v290_v9 = vmax.f32 %v287_v7, 0.0 }
 0x1e9   :  { %485 = vst [vmem:[#allocation12] sm:$0xff] %v290_v9  ;;  %693 = vmatmul.mubr.f32.vlgmr.msra.gmra.mxu0 %v290_v9 }
 0x2a9   :  { %v380_v14 = vpop.f32.mrf.mxu0 }
 0x2aa   :  { %v381_v15 = vadd.f32 %v519_v13, %v380_v14 }
 0x2ab   :  { %v694_v16 = vpop.f32.mrf.mxu0 }
 0x2ac   :  { %v384_v17 = vmax.f32 %v381_v15, 0.0 }
 0x2ae   :  { %728 = vmatmul.mubr.f32.vlgmr.msra.gmra.mxu1 %v384_v17 }
 0x2af   :  { %856 = shalt.err (!%p853_p1)
}
 0x2b0   :  { %505 = dma.vmem_to_hbm [thread:$0]  %s503_s20, 128, %s1088_s10, [#allocation13]   ;;  %v520_v0 = vld [vmem:[%s1086_s8] ss:$0 sm:$0xff] }
 0x2b1   :  { %s905_s25 = smov [#allocation11]  }
 0x2b2   :  { %s492_s26 = sshll.u32 %s905_s25, 4  ;;  %s493_s26 = int_to_ptr.vmem [resolvable:$true] %s492_s26 }
 0x2b3   :  { %s865_s1 = scalar_lea.vmem %s493_s26, 128  ;;  %p870_p3 = scmp.lt.s32.totalorder %s493_s26, %s493_s26 }
 0x2b4   :  { %p866_p2 = scmp.ne.s32.totalorder %s493_s26, %s865_s1  ;;  %p871_p4 = scmp.lt.s32.totalorder %s865_s1, %s865_s1 }
 0x2b6   :  { %p872_p5 = por %p871_p4, %p870_p3 }
 0x2b8   :  { %p873_p6 = pnand %p872_p5, %p866_p2 }
 0x36e   :  { %v474_v18 = vpop.f32.mrf.mxu1 }
 0x36f   :  { %v475_v19 = vadd.f32 %v520_v0, %v474_v18 }
 0x370   :  { %v729_v20 = vpop.f32.mrf.mxu1 }
 0x371   :  { %v521_v21 = vmul.f32 -1.442695, %v475_v19 }
 0x373   :  { %741 = vpow2.f32 %v521_v21 }
 0x380   :  { %v742_v22 = vpop.eup %741 }
 0x381   :  { %v481_v23 = vadd.f32 1.0, %v742_v22 }
 0x383   :  { %743 = vrcp.f32 %v481_v23 }
 0x390   :  { %v744_v24 = vpop.eup %743 }
 0x391   :  { %484 = vst [vmem:[#allocation11] sm:$0xff] %v744_v24 }
 0x392   :  { %876 = shalt.err (!%p873_p6)
}
 0x393   :  { %495 = dma.vmem_to_hbm [thread:$0]  %s493_s26, 128, %s1087_s9, [#allocation4]  }
 0x394   :  { %891 = dma.done.wait [#allocation4], 128  }
 0x395   :  { %892 = vsyncadd [#allocation4], 4294967168 }
 0x396   :  { %893 = dma.done.wait [#allocation13], 128  }
 0x397   :  { %894 = vsyncadd [#allocation13], 4294967168 }
 0x398   :  { %512 = vsyncpa [#allocation3], 1 }
 0x399   :  { %513 = vsyncpa [#allocation6], 1 }
 0x39a   :  { %514 = vsyncpa [#allocation9], 1 }
 0x39b   :  { %515 = vsyncpa [#allocation4], 1 }
 0x39c   :  { %516 = vsyncpa [#allocation13], 1 }

// kernel: tpu_custom_call.1
= control target key start
LH: loop header
LB: loop body
LE: loop exit
PB: predicated region body
PF: predicated region fallthrough
CT: control target
= control target key end

     0   :  { %16 = vsyncpa [#allocation3], 0  ;;  %s1078_s0 = inlined_call_operand.hbm [shape: f32[8,128], index: 0, kind: input, shape index: {}]   ;;  %s1079_s1 = inlined_call_operand.hbm [shape: f32[128,128], index: 1, kind: input, shape index: {}]   ;;  %s1080_s2 = inlined_call_operand.vmem [shape: f32[1,128], index: 2, kind: input, shape index: {}]   ;;  %s1081_s3 = inlined_call_operand.hbm [shape: f32[128,128], index: 3, kind: input, shape index: {}]   ;;  %s1082_s4 = inlined_call_operand.vmem [shape: f32[1,128], index: 4, kind: input, shape index: {}]   ;;  %s1083_s5 = inlined_call_operand.hbm [shape: f32[128,128], index: 5, kind: input, shape index: {}]   ;;  %s1084_s6 = inlined_call_operand.vmem [shape: f32[1,128], index: 6, kind: input, shape index: {}]   ;;  %s1085_s7 = inlined_call_operand.hbm [shape: f32[128,128], index: 7, kind: input, shape index: {}]   ;;  %s1086_s8 = inlined_call_operand.vmem [shape: f32[1,128], index: 8, kind: input, shape index: {}]   ;;  %s1087_s9 = inlined_call_operand.hbm [shape: f32[8,128], index: 9, kind: output, shape index: {0}]   ;;  %s1088_s10 = inlined_call_operand.hbm [shape: f32[8,128], index: 10, kind: output, shape index: {1}]  }
   0x1   :  { %17 = vsyncpa [#allocation6], 0 }
   0x2   :  { %18 = vsyncpa [#allocation9], 0 }
   0x3   :  { %19 = vsyncpa [#allocation4], 0 }
   0x4   :  { %20 = vsyncpa [#allocation13], 0  ;;  %s895_s13 = smov [#allocation5]  }
   0x5   :  { %s36_s14 = sshll.u32 %s895_s13, 4  ;;  %s37_s14 = int_to_ptr.vmem [resolvable:$true] %s36_s14 }
   0x6   :  { %s753_s15 = scalar_lea.vmem %s37_s14, 2048  ;;  %p758_p1 = scmp.lt.s32.totalorder %s37_s14, %s37_s14 }
   0x7   :  { %p754_p0 = scmp.ne.s32.totalorder %s37_s14, %s753_s15  ;;  %p759_p2 = scmp.lt.s32.totalorder %s753_s15, %s753_s15 }
   0x9   :  { %p760_p3 = por %p759_p2, %p758_p1 }
   0xb   :  { %p761_p4 = pnand %p760_p3, %p754_p0 }
   0xd   :  { %764 = shalt.err (!%p761_p4)
}
   0xe   :  { %s896_s16 = smov 128   ;;  %s897_s17 = smov 8  }
   0xf   :  { %42 = dma.hbm_to_vmem [thread:$0]  %s1079_s1, 2048, %s37_s14, [#allocation6], %s896_s16, %s896_s16, %s897_s17  }
  0x10   :  { %s898_s20 = smov [#allocation8]   ;;  %s899_s22 = smov [#allocation2]  }
  0x11   :  { %s64_s21 = sshll.u32 %s898_s20, 4  ;;  %s27_s23 = sshll.u32 %s899_s22, 4  ;;  %s65_s21 = int_to_ptr.vmem [resolvable:$true] %s64_s21  ;;  %s28_s23 = int_to_ptr.vmem [resolvable:$true] %s27_s23 }
  0x12   :  { %s773_s24 = scalar_lea.vmem %s65_s21, 2048  ;;  %p778_p6 = scmp.lt.s32.totalorder %s65_s21, %s65_s21 }
  0x13   :  { %p774_p5 = scmp.ne.s32.totalorder %s65_s21, %s773_s24  ;;  %p779_p7 = scmp.lt.s32.totalorder %s773_s24, %s773_s24 }
  0x15   :  { %p780_p8 = por %p779_p7, %p778_p6 }
  0x17   :  { %p781_p9 = pnand %p780_p8, %p774_p5 }
  0x19   :  { %784 = shalt.err (!%p781_p9)
}
  0x1a   :  { %70 = dma.hbm_to_vmem [thread:$0]  %s1083_s5, 2048, %s65_s21, [#allocation9], %s896_s16, %s896_s16, %s897_s17  }
  0x1b   :  { %s793_s1 = scalar_lea.vmem %s28_s23, 128  ;;  %p798_p11 = scmp.lt.s32.totalorder %s28_s23, %s28_s23 }
  0x1c   :  { %p794_p10 = scmp.ne.s32.totalorder %s28_s23, %s793_s1  ;;  %p799_p12 = scmp.lt.s32.totalorder %s793_s1, %s793_s1 }
  0x1e   :  { %p800_p13 = por %p799_p12, %p798_p11 }
  0x20   :  { %p801_p0 = pnand %p800_p13, %p794_p10 }
  0x22   :  { %804 = shalt.err (!%p801_p0)
}
  0x23   :  { %30 = dma.hbm_to_vmem [thread:$0]  %s1078_s0, 128, %s28_s23, [#allocation3]  }
  0x24   :  { %s900_s29 = smov [#allocation7]   ;;  %s901_s11 = smov [#allocation10]  }
  0x25   :  { %s50_s30 = sshll.u32 %s900_s29, 4  ;;  %s78_s12 = sshll.u32 %s901_s11, 4  ;;  %s51_s30 = int_to_ptr.vmem [resolvable:$true] %s50_s30  ;;  %s79_s12 = int_to_ptr.vmem [resolvable:$true] %s78_s12 }
  0x26   :  { %s813_s13 = scalar_lea.vmem %s51_s30, 2048  ;;  %p818_p2 = scmp.lt.s32.totalorder %s51_s30, %s51_s30 }
  0x27   :  { %p814_p1 = scmp.ne.s32.totalorder %s51_s30, %s813_s13  ;;  %p819_p3 = scmp.lt.s32.totalorder %s813_s13, %s813_s13 }
  0x29   :  { %p820_p4 = por %p819_p3, %p818_p2 }
  0x2b   :  { %p821_p5 = pnand %p820_p4, %p814_p1 }
  0x2d   :  { %824 = shalt.err (!%p821_p5)
}
  0x2e   :  { %56 = dma.hbm_to_vmem [thread:$0]  %s1081_s3, 2048, %s51_s30, [#allocation6], %s896_s16, %s896_s16, %s897_s17  }
  0x2f   :  { %s833_s0 = scalar_lea.vmem %s79_s12, 2048  ;;  %p838_p7 = scmp.lt.s32.totalorder %s79_s12, %s79_s12 }
  0x30   :  { %p834_p6 = scmp.ne.s32.totalorder %s79_s12, %s833_s0  ;;  %p839_p8 = scmp.lt.s32.totalorder %s833_s0, %s833_s0 }
  0x32   :  { %p840_p9 = por %p839_p8, %p838_p7 }
  0x34   :  { %p841_p10 = pnand %p840_p9, %p834_p6 }
  0x36   :  { %844 = shalt.err (!%p841_p10)
}
  0x37   :  { %84 = dma.hbm_to_vmem [thread:$0]  %s1085_s7, 2048, %s79_s12, [#allocation9], %s896_s16, %s896_s16, %s897_s17  }
  0x38   :  { %885 = dma.done.wait [#allocation3], 128  }
  0x39   :  { %886 = vsyncadd [#allocation3], 4294967168 }
  0x3a   :  { %887 = dma.done.wait [#allocation6], 4096  }
  0x3b   :  { %888 = vsyncadd [#allocation6], 4294963200 }
  0x3c   :  { %889 = dma.done.wait [#allocation9], 4096  }
  0x3d   :  { %890 = vsyncadd [#allocation9], 4294963200  ;;  %v902_v0 = vmov 0.0   ;;  %vm903_vm0 = vmmov 0   ;;  %v118_v1 = vld [vmem:[#allocation5 + $0x78] sm:$0xff]  ;;  %v117_v2 = vld [vmem:[#allocation5 + $0x70] sm:$0xff] }
  0x3e   :  { %590 = vmatprep.subr.mxu0 %v902_v0  ;;  %622 = vmatprep.mubr.msk.f32.mxu0 %vm903_vm0, %v902_v0  ;;  %v116_v3 = vld [vmem:[#allocation5 + $0x68] sm:$0xff]  ;;  %v115_v4 = vld [vmem:[#allocation5 + $0x60] sm:$0xff]  ;;  %v212_v5 = vld [vmem:[#allocation7 + $0x78] sm:$0xff] }
  0x3f   :  { %625 = vmatprep.subr.mxu1 %v902_v0  ;;  %657 = vmatprep.mubr.msk.f32.mxu1 %vm903_vm0, %v902_v0  ;;  %v114_v6 = vld [vmem:[#allocation5 + $0x58] sm:$0xff]  ;;  %v211_v7 = vld [vmem:[#allocation7 + $0x70] sm:$0xff]  ;;  %v210_v8 = vld [vmem:[#allocation7 + $0x68] sm:$0xff] }
  0x40   :  { %591 = vmatpush3.msra.mxu0 %v118_v1  ;;  %626 = vmatpush3.msra.mxu1 %v212_v5  ;;  %v113_v9 = vld [vmem:[#allocation5 + $0x50] sm:$0xff]  ;;  %v209_v10 = vld [vmem:[#allocation7 + $0x60] sm:$0xff]  ;;  %v112_v11 = vld [vmem:[#allocation5 + $0x48] sm:$0xff] }
  0x41   :  { %592 = vmatprep.subr.mxu0 %v902_v0  ;;  %627 = vmatprep.subr.mxu1 %v902_v0  ;;  %v208_v12 = vld [vmem:[#allocation7 + $0x58] sm:$0xff]  ;;  %v111_v13 = vld [vmem:[#allocation5 + $0x40] sm:$0xff]  ;;  %v207_v14 = vld [vmem:[#allocation7 + $0x50] sm:$0xff] }
  0x42   :  { %593 = vmatpush3.msra.mxu0 %v117_v2  ;;  %628 = vmatpush3.msra.mxu1 %v211_v7  ;;  %v110_v15 = vld [vmem:[#allocation5 + $0x38] sm:$0xff]  ;;  %v206_v16 = vld [vmem:[#allocation7 + $0x48] sm:$0xff]  ;;  %v109_v17 = vld [vmem:[#allocation5 + $0x30] sm:$0xff] }
  0x43   :  { %594 = vmatprep.subr.mxu0 %v902_v0  ;;  %629 = vmatprep.subr.mxu1 %v902_v0  ;;  %v205_v18 = vld [vmem:[#allocation7 + $0x40] sm:$0xff]  ;;  %v108_v19 = vld [vmem:[#allocation5 + $0x28] sm:$0xff]  ;;  %v204_v20 = vld [vmem:[#allocation7 + $0x38] sm:$0xff] }
  0x44   :  { %595 = vmatpush3.msra.mxu0 %v116_v3  ;;  %630 = vmatpush3.msra.mxu1 %v210_v8  ;;  %v107_v21 = vld [vmem:[#allocation5 + $0x20] sm:$0xff]  ;;  %v203_v22 = vld [vmem:[#allocation7 + $0x30] sm:$0xff]  ;;  %v106_v23 = vld [vmem:[#allocation5 + $0x18] sm:$0xff] }
  0x45   :  { %596 = vmatprep.subr.mxu0 %v902_v0  ;;  %631 = vmatprep.subr.mxu1 %v902_v0  ;;  %v202_v24 = vld [vmem:[#allocation7 + $0x28] sm:$0xff]  ;;  %v105_v25 = vld [vmem:[#allocation5 + $0x10] sm:$0xff]  ;;  %v201_v26 = vld [vmem:[#allocation7 + $0x20] sm:$0xff] }
  0x46   :  { %597 = vmatpush3.msra.mxu0 %v115_v4  ;;  %632 = vmatpush3.msra.mxu1 %v209_v10  ;;  %v104_v27 = vld [vmem:[#allocation5 + $0x8] sm:$0xff]  ;;  %v200_v28 = vld [vmem:[#allocation7 + $0x18] sm:$0xff]  ;;  %v103_v29 = vld [vmem:[#allocation5] sm:$0xff] }
  0x47   :  { %598 = vmatprep.subr.mxu0 %v902_v0  ;;  %633 = vmatprep.subr.mxu1 %v902_v0  ;;  %v102_v30 = vld [vmem:[#allocation2] sm:$0xff]  ;;  %v199_v31 = vld [vmem:[#allocation7 + $0x10] sm:$0xff]  ;;  %v198_v32 = vld [vmem:[#allocation7 + $0x8] sm:$0xff] }
  0x48   :  { %599 = vmatpush3.msra.mxu0 %v114_v6  ;;  %634 = vmatpush3.msra.mxu1 %v208_v12  ;;  %v197_v33 = vld [vmem:[#allocation7] sm:$0xff]  ;;  %v306_v34 = vld [vmem:[#allocation8 + $0x78] sm:$0xff]  ;;  %v305_v35 = vld [vmem:[#allocation8 + $0x70] sm:$0xff] }
  0x49   :  { %600 = vmatprep.subr.mxu0 %v902_v0  ;;  %635 = vmatprep.subr.mxu1 %v902_v0  ;;  %v304_v36 = vld [vmem:[#allocation8 + $0x68] sm:$0xff]  ;;  %v303_v37 = vld [vmem:[#allocation8 + $0x60] sm:$0xff]  ;;  %v302_v38 = vld [vmem:[#allocation8 + $0x58] sm:$0xff] }
  0x4a   :  { %601 = vmatpush3.msra.mxu0 %v113_v9  ;;  %636 = vmatpush3.msra.mxu1 %v207_v14  ;;  %v301_v39 = vld [vmem:[#allocation8 + $0x50] sm:$0xff]  ;;  %v300_v40 = vld [vmem:[#allocation8 + $0x48] sm:$0xff]  ;;  %v299_v41 = vld [vmem:[#allocation8 + $0x40] sm:$0xff] }
  0x4b   :  { %602 = vmatprep.subr.mxu0 %v902_v0  ;;  %637 = vmatprep.subr.mxu1 %v902_v0  ;;  %v298_v42 = vld [vmem:[#allocation8 + $0x38] sm:$0xff]  ;;  %v297_v43 = vld [vmem:[#allocation8 + $0x30] sm:$0xff]  ;;  %v296_v44 = vld [vmem:[#allocation8 + $0x28] sm:$0xff] }
  0x4c   :  { %603 = vmatpush3.msra.mxu0 %v112_v11  ;;  %638 = vmatpush3.msra.mxu1 %v206_v16  ;;  %v295_v45 = vld [vmem:[#allocation8 + $0x20] sm:$0xff]  ;;  %v294_v46 = vld [vmem:[#allocation8 + $0x18] sm:$0xff]  ;;  %v293_v52 = vld [vmem:[#allocation8 + $0x10] sm:$0xff] }
  0x4d   :  { %604 = vmatprep.subr.mxu0 %v902_v0  ;;  %639 = vmatprep.subr.mxu1 %v902_v0  ;;  %v517_v47 = vld [vmem:[%s1080_s2] ss:$0 sm:$0xff]  ;;  %v292_v53 = vld [vmem:[#allocation8 + $0x8] sm:$0xff]  ;;  %v291_v54 = vld [vmem:[#allocation8] sm:$0xff] }
  0x4e   :  { %605 = vmatpush3.msra.mxu0 %v111_v13  ;;  %640 = vmatpush3.msra.mxu1 %v205_v18  ;;  %v400_v55 = vld [vmem:[#allocation10 + $0x78] sm:$0xff]  ;;  %v399_v56 = vld [vmem:[#allocation10 + $0x70] sm:$0xff]  ;;  %v398_v57 = vld [vmem:[#allocation10 + $0x68] sm:$0xff] }
  0x4f   :  { %606 = vmatprep.subr.mxu0 %v902_v0  ;;  %641 = vmatprep.subr.mxu1 %v902_v0  ;;  %v397_v58 = vld [vmem:[#allocation10 + $0x60] sm:$0xff]  ;;  %v396_v59 = vld [vmem:[#allocation10 + $0x58] sm:$0xff]  ;;  %v395_v60 = vld [vmem:[#allocation10 + $0x50] sm:$0xff] }
  0x50   :  { %607 = vmatpush3.msra.mxu0 %v110_v15  ;;  %642 = vmatpush3.msra.mxu1 %v204_v20  ;;  %v394_v61 = vld [vmem:[#allocation10 + $0x48] sm:$0xff]  ;;  %v393_v62 = vld [vmem:[#allocation10 + $0x40] sm:$0xff]  ;;  %v392_v63 = vld [vmem:[#allocation10 + $0x38] sm:$0xff] }
  0x51   :  { %608 = vmatprep.subr.mxu0 %v902_v0  ;;  %643 = vmatprep.subr.mxu1 %v902_v0  ;;  %v391_v1 = vld [vmem:[#allocation10 + $0x30] sm:$0xff]  ;;  %v390_v2 = vld [vmem:[#allocation10 + $0x28] sm:$0xff]  ;;  %v389_v3 = vld [vmem:[#allocation10 + $0x20] sm:$0xff] }
  0x52   :  { %609 = vmatpush3.msra.mxu0 %v109_v17  ;;  %644 = vmatpush3.msra.mxu1 %v203_v22  ;;  %v388_v4 = vld [vmem:[#allocation10 + $0x18] sm:$0xff]  ;;  %v387_v10 = vld [vmem:[#allocation10 + $0x10] sm:$0xff]  ;;  %v386_v11 = vld [vmem:[#allocation10 + $0x8] sm:$0xff] }
  0x53   :  { %610 = vmatprep.subr.mxu0 %v902_v0  ;;  %645 = vmatprep.subr.mxu1 %v902_v0  ;;  %v518_v5 = vld [vmem:[%s1082_s4] ss:$0 sm:$0xff]  ;;  %v385_v12 = vld [vmem:[#allocation10] sm:$0xff]  ;;  %s904_s4 = smov [#allocation12]  }
  0x54   :  { %611 = vmatpush3.msra.mxu0 %v108_v19  ;;  %646 = vmatpush3.msra.mxu1 %v202_v24  ;;  %v519_v13 = vld [vmem:[%s1084_s6] ss:$0 sm:$0xff]  ;;  %s502_s20 = sshll.u32 %s904_s4, 4  ;;  %s503_s20 = int_to_ptr.vmem [resolvable:$true] %s502_s20 }
  0x55   :  { %612 = vmatprep.subr.mxu0 %v902_v0  ;;  %647 = vmatprep.subr.mxu1 %v902_v0  ;;  %s845_s21 = scalar_lea.vmem %s503_s20, 128  ;;  %p850_p12 = scmp.lt.s32.totalorder %s503_s20, %s503_s20 }
  0x56   :  { %613 = vmatpush3.msra.mxu0 %v107_v21  ;;  %648 = vmatpush3.msra.mxu1 %v201_v26  ;;  %p846_p11 = scmp.ne.s32.totalorder %s503_s20, %s845_s21  ;;  %p851_p13 = scmp.lt.s32.totalorder %s845_s21, %s845_s21 }
  0x57   :  { %614 = vmatprep.subr.mxu0 %v902_v0  ;;  %649 = vmatprep.subr.mxu1 %v902_v0 }
  0x58   :  { %615 = vmatpush3.msra.mxu0 %v106_v23  ;;  %650 = vmatpush3.msra.mxu1 %v200_v28  ;;  %p852_p0 = por %p851_p13, %p850_p12 }
  0x59   :  { %616 = vmatprep.subr.mxu0 %v902_v0  ;;  %651 = vmatprep.subr.mxu1 %v902_v0 }
  0x5a   :  { %617 = vmatpush3.msra.mxu0 %v105_v25  ;;  %652 = vmatpush3.msra.mxu1 %v199_v31  ;;  %p853_p1 = pnand %p852_p0, %p846_p11 }
  0x5b   :  { %618 = vmatprep.subr.mxu0 %v902_v0  ;;  %653 = vmatprep.subr.mxu1 %v902_v0 }
  0x5c   :  { %619 = vmatpush3.msra.mxu0 %v104_v27  ;;  %654 = vmatpush3.msra.mxu1 %v198_v32 }
  0x5d   :  { %620 = vmatprep.subr.mxu0 %v902_v0  ;;  %655 = vmatprep.subr.mxu1 %v902_v0 }
  0x5e   :  { %621 = vmatpush3.msra.mxu0 %v103_v29  ;;  %656 = vmatpush3.msra.mxu1 %v197_v33 }
  0x5f   :  { %623 = vmatmul.mubr.f32.vlgmr.msra.gmra.mxu0 %v102_v30  ;;  %660 = vmatprep.subr.mxu0 %v902_v0 }
  0x60   :  { %692 = vmatprep.mubr.msk.f32.mxu0 %vm903_vm0, %v902_v0  ;;  %695 = vmatprep.subr.mxu1 %v902_v0 }
  0x61   :  { %661 = vmatpush3.msra.mxu0 %v306_v34 }
  0x62   :  { %662 = vmatprep.subr.mxu0 %v902_v0 }
  0x63   :  { %663 = vmatpush3.msra.mxu0 %v305_v35 }
  0x64   :  { %664 = vmatprep.subr.mxu0 %v902_v0 }
  0x65   :  { %665 = vmatpush3.msra.mxu0 %v304_v36 }
  0x66   :  { %666 = vmatprep.subr.mxu0 %v902_v0 }
  0x67   :  { %667 = vmatpush3.msra.mxu0 %v303_v37 }
  0x68   :  { %668 = vmatprep.subr.mxu0 %v902_v0 }
  0x69   :  { %669 = vmatpush3.msra.mxu0 %v302_v38 }
  0x6a   :  { %670 = vmatprep.subr.mxu0 %v902_v0 }
  0x6b   :  { %671 = vmatpush3.msra.mxu0 %v301_v39 }
  0x6c   :  { %672 = vmatprep.subr.mxu0 %v902_v0 }
  0x6d   :  { %673 = vmatpush3.msra.mxu0 %v300_v40 }
  0x6e   :  { %674 = vmatprep.subr.mxu0 %v902_v0 }
  0x6f   :  { %675 = vmatpush3.msra.mxu0 %v299_v41 }
  0x70   :  { %676 = vmatprep.subr.mxu0 %v902_v0 }
  0x71   :  { %677 = vmatpush3.msra.mxu0 %v298_v42 }
  0x72   :  { %678 = vmatprep.subr.mxu0 %v902_v0 }
  0x73   :  { %679 = vmatpush3.msra.mxu0 %v297_v43 }
  0x74   :  { %680 = vmatprep.subr.mxu0 %v902_v0 }
  0x75   :  { %681 = vmatpush3.msra.mxu0 %v296_v44 }
  0x76   :  { %682 = vmatprep.subr.mxu0 %v902_v0 }
  0x77   :  { %683 = vmatpush3.msra.mxu0 %v295_v45 }
  0x78   :  { %684 = vmatprep.subr.mxu0 %v902_v0 }
  0x79   :  { %685 = vmatpush3.msra.mxu0 %v294_v46 }
  0x7a   :  { %686 = vmatprep.subr.mxu0 %v902_v0 }
  0x7b   :  { %687 = vmatpush3.msra.mxu0 %v293_v52 }
  0x7c   :  { %688 = vmatprep.subr.mxu0 %v902_v0 }
  0x7d   :  { %689 = vmatpush3.msra.mxu0 %v292_v53 }
  0x7e   :  { %690 = vmatprep.subr.mxu0 %v902_v0 }
  0x7f   :  { %691 = vmatpush3.msra.mxu0 %v291_v54 }
 0x11f   :  { %v192_v48 = vpop.f32.mrf.mxu0 }
 0x120   :  { %v193_v49 = vadd.f32 %v517_v47, %v192_v48 }
 0x121   :  { %v624_v50 = vpop.f32.mrf.mxu0 }
 0x122   :  { %v196_v51 = vmax.f32 %v193_v49, 0.0 }
 0x124   :  { %658 = vmatmul.mubr.f32.vlgmr.msra.gmra.mxu1 %v196_v51 }
 0x125   :  { %727 = vmatprep.mubr.msk.f32.mxu1 %vm903_vm0, %v902_v0  ;;  %696 = vmatpush3.msra.mxu1 %v400_v55 }
 0x126   :  { %697 = vmatprep.subr.mxu1 %v902_v0 }
 0x127   :  { %698 = vmatpush3.msra.mxu1 %v399_v56 }
 0x128   :  { %699 = vmatprep.subr.mxu1 %v902_v0 }
 0x129   :  { %700 = vmatpush3.msra.mxu1 %v398_v57 }
 0x12a   :  { %701 = vmatprep.subr.mxu1 %v902_v0 }
 0x12b   :  { %702 = vmatpush3.msra.mxu1 %v397_v58 }
 0x12c   :  { %703 = vmatprep.subr.mxu1 %v902_v0 }
 0x12d   :  { %704 = vmatpush3.msra.mxu1 %v396_v59 }
 0x12e   :  { %705 = vmatprep.subr.mxu1 %v902_v0 }
 0x12f   :  { %706 = vmatpush3.msra.mxu1 %v395_v60 }
 0x130   :  { %707 = vmatprep.subr.mxu1 %v902_v0 }
 0x131   :  { %708 = vmatpush3.msra.mxu1 %v394_v61 }
 0x132   :  { %709 = vmatprep.subr.mxu1 %v902_v0 }
 0x133   :  { %710 = vmatpush3.msra.mxu1 %v393_v62 }
 0x134   :  { %711 = vmatprep.subr.mxu1 %v902_v0 }
 0x135   :  { %712 = vmatpush3.msra.mxu1 %v392_v63 }
 0x136   :  { %713 = vmatprep.subr.mxu1 %v902_v0 }
 0x137   :  { %714 = vmatpush3.msra.mxu1 %v391_v1 }
 0x138   :  { %715 = vmatprep.subr.mxu1 %v902_v0 }
 0x139   :  { %716 = vmatpush3.msra.mxu1 %v390_v2 }
 0x13a   :  { %717 = vmatprep.subr.mxu1 %v902_v0 }
 0x13b   :  { %718 = vmatpush3.msra.mxu1 %v389_v3 }
 0x13c   :  { %719 = vmatprep.subr.mxu1 %v902_v0 }
 0x13d   :  { %720 = vmatpush3.msra.mxu1 %v388_v4 }
 0x13e   :  { %721 = vmatprep.subr.mxu1 %v902_v0 }
 0x13f   :  { %722 = vmatpush3.msra.mxu1 %v387_v10 }
 0x140   :  { %723 = vmatprep.subr.mxu1 %v902_v0 }
 0x141   :  { %724 = vmatpush3.msra.mxu1 %v386_v11 }
 0x142   :  { %725 = vmatprep.subr.mxu1 %v902_v0 }
 0x143   :  { %726 = vmatpush3.msra.mxu1 %v385_v12 }
 0x1e4   :  { %v286_v6 = vpop.f32.mrf.mxu1 }
 0x1e5   :  { %v287_v7 = vadd.f32 %v518_v5, %v286_v6 }
 0x1e6   :  { %v659_v8 = vpop.f32.mrf.mxu1 }
 0x1e7   :  { %v290_v9 = vmax.f32 %v287_v7, 0.0 }
 0x1e9   :  { %485 = vst [vmem:[#allocation12] sm:$0xff] %v290_v9  ;;  %693 = vmatmul.mubr.f32.vlgmr.msra.gmra.mxu0 %v290_v9 }
 0x2a9   :  { %v380_v14 = vpop.f32.mrf.mxu0 }
 0x2aa   :  { %v381_v15 = vadd.f32 %v519_v13, %v380_v14 }
 0x2ab   :  { %v694_v16 = vpop.f32.mrf.mxu0 }
 0x2ac   :  { %v384_v17 = vmax.f32 %v381_v15, 0.0 }
 0x2ae   :  { %728 = vmatmul.mubr.f32.vlgmr.msra.gmra.mxu1 %v384_v17 }
 0x2af   :  { %856 = shalt.err (!%p853_p1)
}
 0x2b0   :  { %505 = dma.vmem_to_hbm [thread:$0]  %s503_s20, 128, %s1088_s10, [#allocation13]   ;;  %v520_v0 = vld [vmem:[%s1086_s8] ss:$0 sm:$0xff] }
 0x2b1   :  { %s905_s25 = smov [#allocation11]  }
 0x2b2   :  { %s492_s26 = sshll.u32 %s905_s25, 4  ;;  %s493_s26 = int_to_ptr.vmem [resolvable:$true] %s492_s26 }
 0x2b3   :  { %s865_s1 = scalar_lea.vmem %s493_s26, 128  ;;  %p870_p3 = scmp.lt.s32.totalorder %s493_s26, %s493_s26 }
 0x2b4   :  { %p866_p2 = scmp.ne.s32.totalorder %s493_s26, %s865_s1  ;;  %p871_p4 = scmp.lt.s32.totalorder %s865_s1, %s865_s1 }
 0x2b6   :  { %p872_p5 = por %p871_p4, %p870_p3 }
 0x2b8   :  { %p873_p6 = pnand %p872_p5, %p866_p2 }
 0x36e   :  { %v474_v18 = vpop.f32.mrf.mxu1 }
 0x36f   :  { %v475_v19 = vadd.f32 %v520_v0, %v474_v18 }
 0x370   :  { %v729_v20 = vpop.f32.mrf.mxu1 }
 0x371   :  { %v521_v21 = vmul.f32 -1.442695, %v475_v19 }
 0x373   :  { %741 = vpow2.f32 %v521_v21 }
 0x380   :  { %v742_v22 = vpop.eup %741 }
 0x381   :  { %v481_v23 = vadd.f32 1.0, %v742_v22 }
 0x383   :  { %743 = vrcp.f32 %v481_v23 }
 0x390   :  { %v744_v24 = vpop.eup %743 }
 0x391   :  { %484 = vst [vmem:[#allocation11] sm:$0xff] %v744_v24 }
 0x392   :  { %876 = shalt.err (!%p873_p6)
}
 0x393   :  { %495 = dma.vmem_to_hbm [thread:$0]  %s493_s26, 128, %s1087_s9, [#allocation4]  }
 0x394   :  { %891 = dma.done.wait [#allocation4], 128  }
 0x395   :  { %892 = vsyncadd [#allocation4], 4294967168 }
 0x396   :  { %893 = dma.done.wait [#allocation13], 128  }
 0x397   :  { %894 = vsyncadd [#allocation13], 4294967168 }
 0x398   :  { %512 = vsyncpa [#allocation3], 1 }
 0x399   :  { %513 = vsyncpa [#allocation6], 1 }
 0x39a   :  { %514 = vsyncpa [#allocation9], 1 }
 0x39b   :  { %515 = vsyncpa [#allocation4], 1 }
 0x39c   :  { %516 = vsyncpa [#allocation13], 1 }

</bundles_post_ra>
